<compile_context>
chip_gen: v7x
topology: tpu7x:2x2x1
jax: 0.10.0
libtpu: 0.0.40
codegen_flags: <defaults>
</compile_context>

<pallas_src>
import math

import jax
import jax.numpy as jnp
from jax.experimental import pallas as pl
from jax.experimental.pallas import tpu as pltpu

_LANE = 128
_MIB = 1024 * 1024


def _round_up(x, m):
    return ((x + m - 1) // m) * m


def _compiler_params(dimension_semantics, vmem_estimate_bytes):
    vmem_limit = None
    if vmem_estimate_bytes > 16 * _MIB:
        # Raise scoped-VMEM limit (v5e default 16 MiB, v6e/v7x 32 MiB) but stay
        # well under v7x's 64 MiB per-TC physical VMEM.
        vmem_limit = int(min(vmem_estimate_bytes * 3 // 2, 48 * _MIB))
    return pltpu.CompilerParams(
        dimension_semantics=dimension_semantics,
        vmem_limit_bytes=vmem_limit)


# ----------------------------------------------------------------------------
# Kernels
# ----------------------------------------------------------------------------
def _mm_resident_kernel(a_ref, b_ref, o_ref):
    # Whole RHS resident in VMEM; single dot per row block, no accumulator.
    o_ref[...] = jnp.dot(a_ref[...], b_ref[...],
                         preferred_element_type=jnp.float32).astype(o_ref.dtype)


def _mm_kernel(a_ref, b_ref, o_ref, acc_ref):
    @pl.when(pl.program_id(2) == 0)
    def _():
        acc_ref[...] = jnp.zeros_like(acc_ref)

    acc_ref[...] += jnp.dot(a_ref[...], b_ref[...],
                            preferred_element_type=jnp.float32)

    @pl.when(pl.program_id(2) == pl.num_programs(2) - 1)
    def _():
        o_ref[...] = acc_ref[...].astype(o_ref.dtype)


def _mm_bias_kernel(a_ref, b_ref, bias_ref, o_ref, acc_ref):
    @pl.when(pl.program_id(2) == 0)
    def _():
        acc_ref[...] = jnp.zeros_like(acc_ref)

    acc_ref[...] += jnp.dot(a_ref[...], b_ref[...],
                            preferred_element_type=jnp.float32)

    @pl.when(pl.program_id(2) == pl.num_programs(2) - 1)
    def _():
        o_ref[...] = (acc_ref[...] + bias_ref[...]).astype(o_ref.dtype)


# ----------------------------------------------------------------------------
# Pallas-call wrappers
# ----------------------------------------------------------------------------
def _matmul_resident_rhs(a, b, *, tm, out_dtype):
    """a: [M, K], b: [K, N] (b fully resident in VMEM, read once)."""
    M, K = a.shape
    K2, N = b.shape
    assert K == K2 and M % tm == 0

    out_itemsize = jnp.dtype(out_dtype).itemsize
    flops = 2 * M * N * K
    bytes_accessed = (M * K * a.dtype.itemsize + K * N * b.dtype.itemsize
                      + M * N * out_itemsize)
    vmem_est = (2 * tm * K * a.dtype.itemsize + 2 * K * N * b.dtype.itemsize
                + 2 * tm * N * out_itemsize)

    return pl.pallas_call(
        _mm_resident_kernel,
        out_shape=jax.ShapeDtypeStruct((M, N), out_dtype),
        grid_spec=pltpu.PrefetchScalarGridSpec(
            num_scalar_prefetch=0,
            grid=(M // tm,),
            in_specs=[pl.BlockSpec((tm, K), lambda i: (i, 0)),
                      pl.BlockSpec((K, N), lambda i: (0, 0))],
            out_specs=pl.BlockSpec((tm, N), lambda i: (i, 0)),
        ),
        compiler_params=_compiler_params(("parallel",), vmem_est),
        cost_estimate=pl.CostEstimate(flops=flops, transcendentals=0,
                                      bytes_accessed=bytes_accessed),
    )(a, b)


def _tiled_matmul(a, b, bias2d=None, *, tm, tn, tk, out_dtype):
    """a: [M, K], b: [K, N], bias2d: [1, N] or None.  Shapes already padded to
    multiples of the tile sizes.  Grid (i, j, k) with the reduction last."""
    M, K = a.shape
    K2, N = b.shape
    assert K == K2 and M % tm == 0 and K % tk == 0 and N % tn == 0

    grid_i, grid_j, grid_k = M // tm, N // tn, K // tk
    grid = (grid_i, grid_j, grid_k)
    a_spec = pl.BlockSpec((tm, tk), lambda i, j, k: (i, k))
    b_spec = pl.BlockSpec((tk, tn), lambda i, j, k: (k, j))
    out_spec = pl.BlockSpec((tm, tn), lambda i, j, k: (i, j))

    out_itemsize = jnp.dtype(out_dtype).itemsize
    flops = 2 * M * N * K
    # Account for re-reads: A streamed once per j block, B once per i block.
    bytes_accessed = (M * K * a.dtype.itemsize * grid_j
                      + K * N * b.dtype.itemsize * grid_i
                      + M * N * out_itemsize)
    vmem_est = (2 * tm * tk * a.dtype.itemsize + 2 * tk * tn * b.dtype.itemsize
                + tm * tn * 4 + 2 * tm * tn * out_itemsize)

    if bias2d is None:
        kernel = _mm_kernel
        in_specs = [a_spec, b_spec]
        operands = (a, b)
    else:
        kernel = _mm_bias_kernel
        in_specs = [a_spec, b_spec,
                    pl.BlockSpec((1, tn), lambda i, j, k: (0, j))]
        operands = (a, b, bias2d)
        bytes_accessed += bias2d.size * bias2d.dtype.itemsize * grid_i
        vmem_est += 2 * tn * bias2d.dtype.itemsize

    return pl.pallas_call(
        kernel,
        out_shape=jax.ShapeDtypeStruct((M, N), out_dtype),
        grid_spec=pltpu.PrefetchScalarGridSpec(
            num_scalar_prefetch=0,
            grid=grid,
            in_specs=in_specs,
            out_specs=out_spec,
            scratch_shapes=[pltpu.VMEM((tm, tn), jnp.float32)],
        ),
        compiler_params=_compiler_params(("parallel", "parallel", "arbitrary"),
                                         vmem_est),
        cost_estimate=pl.CostEstimate(flops=flops, transcendentals=0,
                                      bytes_accessed=bytes_accessed),
    )(*operands)


# ----------------------------------------------------------------------------
# GCN layer forward.
# ----------------------------------------------------------------------------
def graph_convolution(x, adj, weight, bias=None, *,
                      tile_nodes=512, tile_feat=512,
                      matmul_dtype=jnp.bfloat16,
                      resident_w_bytes=8 * _MIB):
    """GraphConvolution forward: adj @ (x @ weight) [+ bias].

    x:      [N_nodes, F_in]    node features
    adj:    [N_nodes, N_nodes] dense normalized adjacency N(A)
    weight: [F_in, F_out]
    bias:   [F_out] or None
    matmul_dtype: operand dtype for the MXU (default bf16; accumulation stays
                  f32).  Pass None for an exact f32 path.
    """
    n_nodes, f_in = x.shape
    f_out = weight.shape[1]
    out_dtype = x.dtype

    mm_dtype = jnp.dtype(matmul_dtype) if matmul_dtype is not None else jnp.dtype(x.dtype)
    mm_itemsize = mm_dtype.itemsize

    # Node tile: used for rows of both stages and the stage-2 reduction, so it
    # must be a multiple of 128 (adj column blocks stay lane-dense).
    t_nodes = min(tile_nodes, _round_up(n_nodes, _LANE))
    np_nodes = _round_up(n_nodes, t_nodes)

    fin_p = _round_up(f_in, _LANE)
    fout_p = _round_up(f_out, _LANE)

    # Keep all of F_out in one output tile whenever possible so the N x N
    # adjacency is read from HBM exactly once in stage 2 (no j re-reads).
    if fout_p <= max(tile_feat, 1024):
        t_fout = fout_p
    else:
        t_fout = tile_feat
        fout_p = _round_up(f_out, t_fout)

    # Stage-1 plan: keep W fully VMEM-resident (no k loop) when it fits.
    use_resident_w = fin_p * fout_p * mm_itemsize <= resident_w_bytes
    if not use_resident_w:
        t_fin = min(tile_feat, fin_p)
        fin_p = _round_up(f_in, t_fin)

    def pad_cast(a, rows, cols):
        # Cast first (on the smaller, unpadded array), pad only when needed so
        # aligned inputs incur zero extra HBM passes.
        if matmul_dtype is not None and a.dtype != mm_dtype:
            a = a.astype(mm_dtype)
        pr, pc = rows - a.shape[0], cols - a.shape[1]
        if pr or pc:
            a = jnp.pad(a, ((0, pr), (0, pc)))
        return a

    x_p = pad_cast(x, np_nodes, fin_p)
    w_p = pad_cast(weight, fin_p, fout_p)
    adj_p = pad_cast(adj, np_nodes, np_nodes)

    # Keep the intermediate narrow between stages when running bf16.
    support_dtype = mm_dtype if matmul_dtype is not None else out_dtype

    # Stage 1: support = x @ W   (computed exactly once).
    if use_resident_w:
        support_p = _matmul_resident_rhs(x_p, w_p, tm=t_nodes,
                                         out_dtype=support_dtype)
    else:
        support_p = _tiled_matmul(x_p, w_p, None,
                                  tm=t_nodes, tn=t_fout, tk=t_fin,
                                  out_dtype=support_dtype)

    # Stage 2: out = adj @ support (+ bias), bias added in f32 in the epilogue.
    if bias is not None:
        bias2d = jnp.pad(bias.astype(jnp.float32).reshape(1, f_out),
                         ((0, 0), (0, fout_p - f_out)))
    else:
        bias2d = None

    out_p = _tiled_matmul(adj_p, support_p, bias2d,
                          tm=t_nodes, tn=t_fout, tk=t_nodes,
                          out_dtype=out_dtype)

    if np_nodes == n_nodes and fout_p == f_out:
        return out_p
    return out_p[:n_nodes, :f_out]


if __name__ == "__main__":
    key = jax.random.PRNGKey(0)

    def make_problem(key, n_nodes, f_in, f_out):
        k_x, k_adj, k_w, k_b = jax.random.split(key, 4)
        x = jax.random.normal(k_x, (n_nodes, f_in), dtype=jnp.float32)
        a_raw = (jax.random.uniform(k_adj, (n_nodes, n_nodes)) < 0.3).astype(jnp.float32)
        a_raw = a_raw + jnp.eye(n_nodes, dtype=jnp.float32)       # self-loops
        adj = a_raw / jnp.sum(a_raw, axis=1, keepdims=True)       # row-normalize N(A)
        stdv = 1.0 / math.sqrt(f_out)                             # reset_parameters()
        weight = jax.random.uniform(k_w, (f_in, f_out), minval=-stdv, maxval=stdv,
                                    dtype=jnp.float32)
        bias = jax.random.uniform(k_b, (f_out,), minval=-stdv, maxval=stdv,
                                  dtype=jnp.float32)
        return x, adj, weight, bias

    # Small shape consistent with the module (16 nodes, 32 -> 8 features).
    k0, k1 = jax.random.split(key)
    x, adj, weight, bias = make_problem(k0, 16, 32, 8)
    ref = adj @ (x @ weight) + bias

    # Default (bf16 operands, f32 accumulation) path.
    out_bf16 = jax.block_until_ready(graph_convolution(x, adj, weight, bias))
    assert out_bf16.shape == ref.shape
    assert jnp.allclose(out_bf16, ref, atol=8e-2, rtol=5e-2)

    # Exact f32 path (tight correctness check of the kernel math).
    out_f32 = jax.block_until_ready(
        graph_convolution(x, adj, weight, bias, matmul_dtype=None))
    assert jnp.allclose(out_f32, ref, atol=1e-4, rtol=1e-4)

    # No-bias path (skips the bias DMA/add entirely).
    out_nb = jax.block_until_ready(
        graph_convolution(x, adj, weight, None, matmul_dtype=None))
    assert jnp.allclose(out_nb, adj @ (x @ weight), atol=1e-4, rtol=1e-4)

    # Larger, non-tile-aligned shape to exercise padding, the multi-step
    # k-reduction and multi-row-block grid (128 tiles -> grid i=2, k=2).
    x2, adj2, weight2, bias2 = make_problem(k1, 200, 96, 40)
    ref2 = adj2 @ (x2 @ weight2) + bias2
    out2_f32 = jax.block_until_ready(
        graph_convolution(x2, adj2, weight2, bias2,
                          tile_nodes=128, tile_feat=128, matmul_dtype=None))
    assert jnp.allclose(out2_f32, ref2, atol=1e-4, rtol=1e-4)
    out2_bf16 = jax.block_until_ready(
        graph_convolution(x2, adj2, weight2, bias2,
                          tile_nodes=128, tile_feat=128))
    assert jnp.allclose(out2_bf16, ref2, atol=1e-1, rtol=5e-2)

    print("KERNEL_OK")
</pallas_src>

<mosaic_0001>
module attributes {stable_mosaic.version = 11 : i64} {
  func.func @_mm_resident_kernel(%arg0: i32, %arg1: memref<128x128xbf16, #tpu.memory_space<vmem>>, %arg2: memref<128x128xbf16, #tpu.memory_space<vmem>>, %arg3: memref<128x128xbf16, #tpu.memory_space<vmem>>) attributes {dimension_semantics = [#tpu.dimension_semantics<parallel>], iteration_bounds = array<i64: 1>, scalar_prefetch = 0 : i64, scratch_operands = 0 : i64, tpu.core_type = #tpu.core_type<tc>, window_params = [{transform_indices = @transform_0, window_bounds = array<i64: 128, 128>}, {pipeline_mode = #tpu.pipeline_mode<synchronous>, transform_indices = @transform_1, window_bounds = array<i64: 128, 128>}, {transform_indices = @transform_2, window_bounds = array<i64: 128, 128>}]} {
    %c0 = arith.constant 0 : index
    %c0_0 = arith.constant 0 : index
    %0 = vector.load %arg1[%c0, %c0_0] : memref<128x128xbf16, #tpu.memory_space<vmem>>, vector<128x128xbf16>
    %c0_1 = arith.constant 0 : index
    %c0_2 = arith.constant 0 : index
    %1 = vector.load %arg2[%c0_1, %c0_2] : memref<128x128xbf16, #tpu.memory_space<vmem>>, vector<128x128xbf16>
    %cst = arith.constant dense<0.000000e+00> : vector<128x128xf32>
    %2 = tpu.matmul %0, %1, %cst {dimension_numbers = #tpu.dot_dimension_numbers<[1], [0], [0], [1], [0, 0, 1, 1], [], []>} : vector<128x128xbf16>, vector<128x128xbf16>, vector<128x128xf32> -> vector<128x128xf32>
    %3 = arith.truncf %2 : vector<128x128xf32> to vector<128x128xbf16>
    %c0_3 = arith.constant 0 : index
    %c0_4 = arith.constant 0 : index
    %4 = vector.load %arg3[%c0_3, %c0_4] : memref<128x128xbf16, #tpu.memory_space<vmem>>, vector<128x128xbf16>
    tpu.vector_store %arg3[%c0_3, %c0_4], %3 {strides = array<i32>} : memref<128x128xbf16, #tpu.memory_space<vmem>>, vector<128x128xbf16>,
    return
  }
  func.func @transform_0(%arg0: i32) -> (i32, i32) {
    %c0_i32 = arith.constant 0 : i32
    %c0_i32_0 = arith.constant 0 : i32
    return %arg0, %c0_i32 : i32, i32
  }
  func.func @transform_1(%arg0: i32) -> (i32, i32) {
    %c0_i32 = arith.constant 0 : i32
    %c0_i32_0 = arith.constant 0 : i32
    %c0_i32_1 = arith.constant 0 : i32
    return %c0_i32, %c0_i32_0 : i32, i32
  }
  func.func @transform_2(%arg0: i32) -> (i32, i32) {
    %c0_i32 = arith.constant 0 : i32
    %c0_i32_0 = arith.constant 0 : i32
    return %arg0, %c0_i32 : i32, i32
  }
}

</mosaic_0001>

<bundles_post_ra>
// kernel: tpu_custom_call.1
= control target key start
LH: loop header
LB: loop body
LE: loop exit
PB: predicated region body
PF: predicated region fallthrough
CT: control target
= control target key end

     0   :  { %7 = vsyncpa [#allocation3], 0  ;;  %s681_s0 = inlined_call_operand.hbm [shape: bf16[128,128], index: 0, kind: input, shape index: {}]   ;;  %s682_s1 = inlined_call_operand.hbm [shape: bf16[128,128], index: 1, kind: input, shape index: {}]   ;;  %s683_s2 = inlined_call_operand.hbm [shape: bf16[128,128], index: 2, kind: output, shape index: {}]  }
   0x1   :  { %8 = vsyncpa [#allocation6], 0 }
   0x2   :  { %9 = vsyncpa [#allocation4], 0  ;;  %s616_s9 = smov [#allocation2]   ;;  %s544_s13 = scalar_lea.hbm %s681_s0, 1024 }
   0x3   :  { %s15_s10 = sshll.u32 %s616_s9, 4  ;;  %p545_p0 = scmp.ne.s32.totalorder %s681_s0, %s544_s13  ;;  %s16_s10 = int_to_ptr.vmem [resolvable:$true] %s15_s10 }
   0x4   :  { %p548_p1 = scmp.lt.u32.totalorder %s544_s13, %s681_s0 }
   0x6   :  { %p550_p2 = pnand %p548_p1, %p545_p0 }
   0x8   :  { %553 = shalt.err (!%p550_p2)
}
   0x9   :  { %s554_s18 = scalar_lea.vmem %s16_s10, 1024  ;;  %p559_p4 = scmp.lt.s32.totalorder %s16_s10, %s16_s10 }
   0xa   :  { %p555_p3 = scmp.ne.s32.totalorder %s16_s10, %s554_s18  ;;  %p560_p5 = scmp.lt.s32.totalorder %s554_s18, %s554_s18 }
   0xc   :  { %p561_p6 = por %p560_p5, %p559_p4 }
   0xe   :  { %p562_p7 = pnand %p561_p6, %p555_p3 }
  0x10   :  { %565 = shalt.err (!%p562_p7)
}
  0x11   :  { %s617_s19 = smov 64   ;;  %s618_s20 = smov 4  }
  0x12   :  { %21 = dma.hbm_to_vmem [thread:$0]  %s681_s0, 1024, %s16_s10, [#allocation3], %s617_s19, %s617_s19, %s618_s20  }
  0x13   :  { %s619_s23 = smov [#allocation5]   ;;  %s566_s27 = scalar_lea.hbm %s682_s1, 1024 }
  0x14   :  { %s27_s24 = sshll.u32 %s619_s23, 4  ;;  %p567_p8 = scmp.ne.s32.totalorder %s682_s1, %s566_s27  ;;  %s28_s24 = int_to_ptr.vmem [resolvable:$true] %s27_s24 }
  0x15   :  { %p570_p9 = scmp.lt.u32.totalorder %s566_s27, %s682_s1 }
  0x17   :  { %p572_p10 = pnand %p570_p9, %p567_p8 }
  0x19   :  { %575 = shalt.err (!%p572_p10)
}
  0x1a   :  { %s576_s4 = scalar_lea.vmem %s28_s24, 1024  ;;  %p581_p12 = scmp.lt.s32.totalorder %s28_s24, %s28_s24 }
  0x1b   :  { %p577_p11 = scmp.ne.s32.totalorder %s28_s24, %s576_s4  ;;  %p582_p13 = scmp.lt.s32.totalorder %s576_s4, %s576_s4 }
  0x1d   :  { %p583_p0 = por %p582_p13, %p581_p12 }
  0x1f   :  { %p584_p1 = pnand %p583_p0, %p577_p11 }
  0x21   :  { %587 = shalt.err (!%p584_p1)
}
  0x22   :  { %33 = dma.hbm_to_vmem [thread:$0]  %s682_s1, 1024, %s28_s24, [#allocation6], %s617_s19, %s617_s19, %s618_s20  }
  0x23   :  { %610 = dma.done.wait [#allocation3], 1024  }
  0x24   :  { %611 = vsyncadd [#allocation3], 4294966272 }
  0x25   :  { %612 = dma.done.wait [#allocation6], 1024  }
  0x26   :  { %613 = vsyncadd [#allocation6], 4294966272  ;;  %v528_v0 = vld [vmem:[#allocation5] sm:$0xff]   ;;  %v529_v1 = vld [vmem:[#allocation5 + $0x8] sm:$0xff]   ;;  %s620_s1 = smov [#allocation7]  }
  0x27   :  { %475 = vmatprep.subr.bf16.mxu0 %v528_v0  ;;  %507 = vmatprep.subr.bf16.mxu1 %v528_v0  ;;  %v530_v2 = vld [vmem:[#allocation5 + $0x10] sm:$0xff]   ;;  %v531_v3 = vld [vmem:[#allocation5 + $0x18] sm:$0xff]   ;;  %v536_v4 = vld [vmem:[#allocation2] sm:$0xff]   ;;  %s351_s6 = sshll.u32 %s620_s1, 4  ;;  %s352_s6 = int_to_ptr.vmem [resolvable:$true] %s351_s6 }
  0x28   :  { %476 = vmatpush3.bf16.msra.mxu0 %v528_v0  ;;  %515 = vmatpush3.bf16.msra.mxu1 %v528_v0  ;;  %v537_v5 = vld [vmem:[#allocation2 + $0x20] sm:$0xff]   ;;  %v533_v7 = vld [vmem:[#allocation5 + $0x28] sm:$0xff]   ;;  %v534_v8 = vld [vmem:[#allocation5 + $0x30] sm:$0xff]   ;;  %s588_s7 = scalar_lea.vmem %s352_s6, 1024  ;;  %p593_p3 = scmp.lt.s32.totalorder %s352_s6, %s352_s6 }
  0x29   :  { %477 = vmatprep.subr.bf16.mxu0 %v529_v1  ;;  %508 = vmatprep.subr.bf16.mxu1 %v529_v1  ;;  %v532_v6 = vld [vmem:[#allocation5 + $0x20] sm:$0xff]   ;;  %v535_v9 = vld [vmem:[#allocation5 + $0x38] sm:$0xff]   ;;  %v538_v10 = vld [vmem:[#allocation2 + $0x8] sm:$0xff]   ;;  %p589_p2 = scmp.ne.s32.totalorder %s352_s6, %s588_s7  ;;  %p594_p4 = scmp.lt.s32.totalorder %s588_s7, %s588_s7 }
  0x2a   :  { %491 = vmatprep.mubr.bf16.mxu0 %v536_v4  ;;  %499 = vmatprep.mubr.bf16.mxu1 %v537_v5  ;;  %v539_v11 = vld [vmem:[#allocation2 + $0x28] sm:$0xff]   ;;  %v540_v12 = vld [vmem:[#allocation2 + $0x10] sm:$0xff]   ;;  %v542_v14 = vld [vmem:[#allocation2 + $0x18] sm:$0xff]  }
  0x2b   :  { %v541_v13 = vld [vmem:[#allocation2 + $0x30] sm:$0xff]   ;;  %v543_v15 = vld [vmem:[#allocation2 + $0x38] sm:$0xff]   ;;  %p595_p5 = por %p594_p4, %p593_p3 }
  0x2c   :  { %478 = vmatpush3.bf16.msra.mxu0 %v529_v1  ;;  %516 = vmatpush3.bf16.msra.mxu1 %v529_v1 }
  0x2d   :  { %479 = vmatprep.subr.bf16.mxu0 %v530_v2  ;;  %509 = vmatprep.subr.bf16.mxu1 %v530_v2  ;;  %p596_p6 = pnand %p595_p5, %p589_p2 }
  0x30   :  { %480 = vmatpush3.bf16.msra.mxu0 %v530_v2  ;;  %517 = vmatpush3.bf16.msra.mxu1 %v530_v2 }
  0x31   :  { %481 = vmatprep.subr.bf16.mxu0 %v531_v3  ;;  %510 = vmatprep.subr.bf16.mxu1 %v531_v3 }
  0x34   :  { %482 = vmatpush3.bf16.msra.mxu0 %v531_v3  ;;  %518 = vmatpush3.bf16.msra.mxu1 %v531_v3 }
  0x35   :  { %483 = vmatprep.subr.bf16.mxu0 %v532_v6  ;;  %511 = vmatprep.subr.bf16.mxu1 %v532_v6 }
  0x38   :  { %484 = vmatpush3.bf16.msra.mxu0 %v532_v6  ;;  %519 = vmatpush3.bf16.msra.mxu1 %v532_v6 }
  0x39   :  { %485 = vmatprep.subr.bf16.mxu0 %v533_v7  ;;  %512 = vmatprep.subr.bf16.mxu1 %v533_v7 }
  0x3c   :  { %486 = vmatpush3.bf16.msra.mxu0 %v533_v7  ;;  %520 = vmatpush3.bf16.msra.mxu1 %v533_v7 }
  0x3d   :  { %487 = vmatprep.subr.bf16.mxu0 %v534_v8  ;;  %513 = vmatprep.subr.bf16.mxu1 %v534_v8 }
  0x40   :  { %488 = vmatpush3.bf16.msra.mxu0 %v534_v8  ;;  %521 = vmatpush3.bf16.msra.mxu1 %v534_v8 }
  0x41   :  { %489 = vmatprep.subr.bf16.mxu0 %v535_v9  ;;  %514 = vmatprep.subr.bf16.mxu1 %v535_v9 }
  0x44   :  { %490 = vmatpush3.bf16.msra.mxu0 %v535_v9  ;;  %522 = vmatpush3.bf16.msra.mxu1 %v535_v9 }
  0x47   :  { %492 = vmatmul.mubr.bf16.vlgmr.msra.gmra.mrb[0].mxu0 %v538_v10  ;;  %500 = vmatmul.mubr.bf16.vlgmr.msra.gmra.mrb[0].mxu1 %v539_v11 }
  0x48   :  { %495 = vmatprep.mubr.bf16.mxu0 %v540_v12  ;;  %503 = vmatprep.mubr.bf16.mxu1 %v541_v13 }
  0x4f   :  { %496 = vmatmul.mubr.bf16.gmra.mrb[4].mxu0 %v542_v14  ;;  %504 = vmatmul.mubr.bf16.gmra.mrb[4].mxu1 %v543_v15 }
 0x11a   :  { %v493_v16 = vpop.f32.mrb[0].mxu0  ;;  %v501_v17 = vpop.f32.mrb[0].mxu1 }
 0x11b   :  { %v203_v18 = vpop.f32.mrb[1].mxu0  ;;  %v235_v19 = vpop.f32.mrb[1].mxu1 }
 0x11c   :  { %v494_v20 = vpop.f32.mrb[2].mxu0  ;;  %v502_v21 = vpop.f32.mrb[2].mxu1 }
 0x11d   :  { %v420_v22 = vpack.c.bf16 %v494_v20, %v493_v16  ;;  %v440_v23 = vpack.c.bf16 %v502_v21, %v501_v17  ;;  %v206_v24 = vpop.f32.mrb[3].mxu0  ;;  %v238_v25 = vpop.f32.mrb[3].mxu1 }
 0x11e   :  { %v415_v26 = vpack.c.bf16 %v206_v24, %v203_v18  ;;  %v435_v27 = vpack.c.bf16 %v238_v25, %v235_v19 }
 0x11f   :  { %452 = vst [vmem:[#allocation7 + $0x8] sm:$0xff] %v420_v22   ;;  %456 = vst [vmem:[#allocation7 + $0x28] sm:$0xff] %v440_v23  }
 0x120   :  { %416 = vst [vmem:[#allocation7] sm:$0xff] %v415_v26   ;;  %455 = vst [vmem:[#allocation7 + $0x20] sm:$0xff] %v435_v27  }
 0x122   :  { %v497_v28 = vpop.f32.mrb[4].mxu0  ;;  %v505_v29 = vpop.f32.mrb[4].mxu1 }
 0x123   :  { %v219_v30 = vpop.f32.mrb[5].mxu0  ;;  %v251_v31 = vpop.f32.mrb[5].mxu1 }
 0x124   :  { %v498_v32 = vpop.f32.mrb[6].mxu0  ;;  %v506_v33 = vpop.f32.mrb[6].mxu1 }
 0x125   :  { %v430_v34 = vpack.c.bf16 %v498_v32, %v497_v28  ;;  %v450_v35 = vpack.c.bf16 %v506_v33, %v505_v29  ;;  %v222_v36 = vpop.f32.mrb[7].mxu0  ;;  %v254_v37 = vpop.f32.mrb[7].mxu1 }
 0x126   :  { %v425_v38 = vpack.c.bf16 %v222_v36, %v219_v30  ;;  %v445_v39 = vpack.c.bf16 %v254_v37, %v251_v31 }
 0x127   :  { %454 = vst [vmem:[#allocation7 + $0x18] sm:$0xff] %v430_v34   ;;  %458 = vst [vmem:[#allocation7 + $0x38] sm:$0xff] %v450_v35  }
 0x128   :  { %453 = vst [vmem:[#allocation7 + $0x10] sm:$0xff] %v425_v38   ;;  %457 = vst [vmem:[#allocation7 + $0x30] sm:$0xff] %v445_v39  }
 0x129   :  { %599 = shalt.err (!%p596_p6)
}
 0x12a   :  { %s600_s10 = scalar_lea.hbm %s683_s2, 1024 }
 0x12b   :  { %p601_p7 = scmp.ne.s32.totalorder %s683_s2, %s600_s10  ;;  %p604_p8 = scmp.lt.u32.totalorder %s600_s10, %s683_s2 }
 0x12d   :  { %p606_p9 = pnand %p604_p8, %p601_p7 }
 0x12f   :  { %609 = shalt.err (!%p606_p9)
}
 0x130   :  { %357 = dma.vmem_to_hbm [thread:$0]  %s352_s6, 1024, %s683_s2, [#allocation4], %s617_s19, %s617_s19, %s618_s20  }
 0x131   :  { %614 = dma.done.wait [#allocation4], 1024  }
 0x132   :  { %615 = vsyncadd [#allocation4], 4294966272 }
 0x133   :  { %361 = vsyncpa [#allocation3], 1 }
 0x134   :  { %362 = vsyncpa [#allocation6], 1 }
 0x135   :  { %363 = vsyncpa [#allocation4], 1 }

</bundles_post_ra>
